<compile_context>
chip_gen: v7x
topology: tpu7x:2x2x1
jax: 0.10.0
libtpu: 0.0.40
codegen_flags: <defaults>
</compile_context>

<pallas_src>
import math

import jax
import jax.numpy as jnp
from jax import lax
from jax.experimental import pallas as pl
from jax.experimental.pallas import tpu as pltpu


_INV_SQRT2 = 1.0 / math.sqrt(2.0)
_SQRT_2_OVER_PI = math.sqrt(2.0 / math.pi)


def _gelu_kernel_exact(x_ref, o_ref):
    # f32 compute regardless of I/O dtype (exact-erf GELU), cast on store.
    x = x_ref[...].astype(jnp.float32)
    y = x * 0.5 * (1.0 + lax.erf(x * _INV_SQRT2))
    o_ref[...] = y.astype(o_ref.dtype)


def _gelu_kernel_tanh(x_ref, o_ref):
    # Opt-in tanh approximation: one EUP tanh + a handful of VALU ops.
    x = x_ref[...].astype(jnp.float32)
    inner = _SQRT_2_OVER_PI * (x + 0.044715 * x * x * x)
    y = 0.5 * x * (1.0 + jnp.tanh(inner))
    o_ref[...] = y.astype(o_ref.dtype)


def _gelu_jnp(x, approximate=False):
    xf = x.astype(jnp.float32)
    if approximate:
        y = 0.5 * xf * (1.0 + jnp.tanh(_SQRT_2_OVER_PI * (xf + 0.044715 * xf ** 3)))
    else:
        y = xf * 0.5 * (1.0 + lax.erf(xf * _INV_SQRT2))
    return y.astype(x.dtype)


def gelu_pallas(x, *, approximate=False, target_tile_bytes=4 * 1024 * 1024):
    """Exact-erf GELU (or opt-in tanh approx), elementwise, any float shape."""
    orig_shape = x.shape
    orig_dtype = x.dtype
    n = x.size
    if n == 0:
        return x

    itemsize = jnp.dtype(orig_dtype).itemsize
    # Minimum sublane multiple per tile: 8 (f32), 16 (bf16), 32 (1-byte).
    sub = max(8 * (4 // max(itemsize, 1)), 8)

    kernel = _gelu_kernel_tanh if approximate else _gelu_kernel_exact
    flat = jnp.ravel(x)  # free metadata reshape

    # Widest lane width that divides n exactly (lane-dense, unmasked stores).
    # Only the lane dim needs exact divisibility — Pallas masks a partial
    # final row-block, so this path is zero-copy for any n % 128 == 0.
    lane_width = None
    for cand in (1024, 512, 256, 128):
        if n % cand == 0:
            lane_width = cand
            break

    tail = None
    if lane_width is not None:
        bulk = flat
        bulk_n = n
    else:
        # Awkward size: kernel on the 128-aligned bulk, tiny tail (<128) in jnp.
        lane_width = 128
        bulk_n = (n // lane_width) * lane_width
        if bulk_n == 0:
            # Tensor smaller than one lane row — not worth a kernel launch.
            return _gelu_jnp(x, approximate)
        bulk = flat[:bulk_n]
        tail = flat[bulk_n:]

    rows = bulk_n // lane_width
    x2d = bulk.reshape(rows, lane_width)

    # Row tile: ~target_tile_bytes, multiple of the dtype's min sublane count,
    # but capped so that the grid has >= ~8 steps when the tensor permits
    # (keeps the double-buffer pipeline busy and lets v7x split across TCs).
    tr = max(target_tile_bytes // (lane_width * itemsize), sub)
    tr = (tr // sub) * sub
    cap = (rows // 8 // sub) * sub
    if cap >= sub:
        tr = min(tr, cap)
    if tr >= rows:
        tr = rows  # single block covering the full array (always legal)

    grid_steps = pl.cdiv(rows, tr)
    tile_bytes = tr * lane_width * itemsize
    # 2 input + 2 output double-buffered tiles + slack; generation-safe.
    vmem_limit = max(4 * tile_bytes + (4 << 20), 16 << 20)

    cost = pl.CostEstimate(
        flops=25 * bulk_n,          # erf rational approx + mul/add, all VALU
        transcendentals=bulk_n if approximate else 0,
        bytes_accessed=2 * bulk_n * itemsize,
    )

    out2d = pl.pallas_call(
        kernel,
        out_shape=jax.ShapeDtypeStruct((rows, lane_width), orig_dtype),
        grid_spec=pltpu.PrefetchScalarGridSpec(
            num_scalar_prefetch=0,
            grid=(grid_steps,),
            in_specs=[pl.BlockSpec((tr, lane_width), lambda i: (i, 0))],
            out_specs=pl.BlockSpec((tr, lane_width), lambda i: (i, 0)),
        ),
        compiler_params=pltpu.CompilerParams(
            dimension_semantics=("parallel",),
            vmem_limit_bytes=vmem_limit,
        ),
        cost_estimate=cost,
    )(x2d)

    if tail is not None:
        out_flat = jnp.concatenate([out2d.reshape(-1), _gelu_jnp(tail, approximate)])
        return out_flat.reshape(orig_shape)
    return out2d.reshape(orig_shape)


def gelu_ref(x):
    return _gelu_jnp(x, approximate=False)


if __name__ == "__main__":
    key = jax.random.PRNGKey(0)

    # NCHW input, matching the PyTorch module's usage.
    x = jax.random.normal(key, (2, 4, 16, 16), dtype=jnp.float32)
    out = jax.block_until_ready(gelu_pallas(x))
    ref = gelu_ref(x)
    assert out.shape == x.shape and out.dtype == x.dtype
    assert jnp.allclose(out, ref, atol=1e-6, rtol=1e-6)

    # Larger aligned case: exercises a multi-step grid (pipelined, parallel).
    x1 = jax.random.normal(jax.random.PRNGKey(2), (8, 256, 128), dtype=jnp.float32)
    out1 = jax.block_until_ready(gelu_pallas(x1))
    assert jnp.allclose(out1, gelu_ref(x1), atol=1e-6, rtol=1e-6)

    # Awkward (non-128-divisible) size and bf16 path: bulk kernel + jnp tail.
    x2 = jax.random.normal(jax.random.PRNGKey(1), (3, 5, 7, 11), dtype=jnp.bfloat16)
    out2 = jax.block_until_ready(gelu_pallas(x2))
    assert out2.shape == x2.shape and out2.dtype == x2.dtype
    assert jnp.allclose(out2.astype(jnp.float32), gelu_ref(x2).astype(jnp.float32),
                        atol=2e-2, rtol=2e-2)

    print("KERNEL_OK")
</pallas_src>

<mosaic_0001>
module attributes {stable_mosaic.version = 11 : i64} {
  func.func @_gelu_kernel_exact(%arg0: i32, %arg1: memref<2x1024xf32, #tpu.memory_space<vmem>>, %arg2: memref<2x1024xf32, #tpu.memory_space<vmem>>) attributes {dimension_semantics = [#tpu.dimension_semantics<parallel>], iteration_bounds = array<i64: 1>, scalar_prefetch = 0 : i64, scratch_operands = 0 : i64, tpu.core_type = #tpu.core_type<tc>, window_params = [{transform_indices = @transform_0, window_bounds = array<i64: 2, 1024>}, {transform_indices = @transform_1, window_bounds = array<i64: 2, 1024>}]} {
    %c0 = arith.constant 0 : index
    %c0_0 = arith.constant 0 : index
    %0 = vector.load %arg1[%c0, %c0_0] : memref<2x1024xf32, #tpu.memory_space<vmem>>, vector<2x1024xf32>
    %cst = arith.constant 5.000000e-01 : f32
    %1 = vector.broadcast %cst : f32 to vector<2x1024xf32>
    %2 = arith.mulf %0, %1 : vector<2x1024xf32>
    %cst_1 = arith.constant 0.707106769 : f32
    %3 = vector.broadcast %cst_1 : f32 to vector<2x1024xf32>
    %4 = arith.mulf %0, %3 : vector<2x1024xf32>
    %5 = math.erf %4 : vector<2x1024xf32>
    %cst_2 = arith.constant 1.000000e+00 : f32
    %6 = vector.broadcast %cst_2 : f32 to vector<2x1024xf32>
    %7 = arith.addf %6, %5 : vector<2x1024xf32>
    %8 = arith.mulf %2, %7 : vector<2x1024xf32>
    %c0_3 = arith.constant 0 : index
    %c0_4 = arith.constant 0 : index
    %9 = vector.load %arg2[%c0_3, %c0_4] : memref<2x1024xf32, #tpu.memory_space<vmem>>, vector<2x1024xf32>
    tpu.vector_store %arg2[%c0_3, %c0_4], %8 {strides = array<i32>} : memref<2x1024xf32, #tpu.memory_space<vmem>>, vector<2x1024xf32>,
    return
  }
  func.func @transform_0(%arg0: i32) -> (i32, i32) {
    %c0_i32 = arith.constant 0 : i32
    %c0_i32_0 = arith.constant 0 : i32
    return %arg0, %c0_i32 : i32, i32
  }
  func.func @transform_1(%arg0: i32) -> (i32, i32) {
    %c0_i32 = arith.constant 0 : i32
    %c0_i32_0 = arith.constant 0 : i32
    return %arg0, %c0_i32 : i32, i32
  }
}

</mosaic_0001>

<bundles_post_ra>
// kernel: tpu_custom_call.1
= control target key start
LH: loop header
LB: loop body
LE: loop exit
PB: predicated region body
PF: predicated region fallthrough
CT: control target
= control target key end

     0   :  { %6 = vsyncpa [#allocation3], 0  ;;  %s140_s0 = inlined_call_operand.hbm [shape: f32[2,1024], index: 0, kind: input, shape index: {}]   ;;  %s141_s1 = inlined_call_operand.hbm [shape: f32[2,1024], index: 1, kind: output, shape index: {}]  }
   0x1   :  { %7 = vsyncpa [#allocation4], 0  ;;  %s104_s6 = smov [#allocation2]   ;;  %s56_s10 = scalar_lea.hbm %s140_s0, 256 }
   0x2   :  { %s14_s7 = sshll.u32 %s104_s6, 4  ;;  %p57_p0 = scmp.ne.s32.totalorder %s140_s0, %s56_s10  ;;  %s15_s7 = int_to_ptr.vmem [resolvable:$true] %s14_s7 }
   0x3   :  { %p60_p1 = scmp.lt.u32.totalorder %s56_s10, %s140_s0 }
   0x5   :  { %p62_p2 = pnand %p60_p1, %p57_p0 }
   0x7   :  { %65 = shalt.err (!%p62_p2)
}
   0x8   :  { %s66_s15 = scalar_lea.vmem %s15_s7, 256  ;;  %p71_p4 = scmp.lt.s32.totalorder %s15_s7, %s15_s7 }
   0x9   :  { %p67_p3 = scmp.ne.s32.totalorder %s15_s7, %s66_s15  ;;  %p72_p5 = scmp.lt.s32.totalorder %s66_s15, %s66_s15 }
   0xb   :  { %p73_p6 = por %p72_p5, %p71_p4 }
   0xd   :  { %p74_p7 = pnand %p73_p6, %p67_p3 }
   0xf   :  { %77 = shalt.err (!%p74_p7)
}
  0x10   :  { %17 = dma.hbm_to_vmem [thread:$0]  %s140_s0, 256, %s15_s7, [#allocation3]  }
  0x11   :  { %100 = dma.done.wait [#allocation3], 256  }
  0x12   :  { %101 = vsyncadd [#allocation3], 4294967040  ;;  %v21_v0 = vld [vmem:[#allocation2] sm:$0xff]  ;;  %v22_v1 = vld [vmem:[#allocation2 + $0x8] sm:$0xff]  ;;  %s105_s18 = smov [#allocation5]  }
  0x13   :  { %v25_v2 = vmul.f32 0.70710677, %v21_v0  ;;  %v26_v3 = vmul.f32 0.70710677, %v22_v1  ;;  %v23_v4 = vmul.f32 0.5, %v21_v0  ;;  %v24_v6 = vmul.f32 0.5, %v22_v1 }
  0x14   :  { %s41_s19 = sshll.u32 %s105_s18, 4  ;;  %s42_s19 = int_to_ptr.vmem [resolvable:$true] %s41_s19 }
  0x15   :  { %52 = verf.f32 %v25_v2  ;;  %s78_s0 = scalar_lea.vmem %s42_s19, 256  ;;  %p83_p9 = scmp.lt.s32.totalorder %s42_s19, %s42_s19 }
  0x16   :  { %54 = verf.f32 %v26_v3  ;;  %p79_p8 = scmp.ne.s32.totalorder %s42_s19, %s78_s0  ;;  %p84_p10 = scmp.lt.s32.totalorder %s78_s0, %s78_s0 }
  0x18   :  { %p85_p11 = por %p84_p10, %p83_p9 }
  0x1a   :  { %p86_p12 = pnand %p85_p11, %p79_p8 }
  0x1f   :  { %v53_v5 = vpop.eup %52 }
  0x20   :  { %v55_v7 = vpop.eup %54  ;;  %v29_v8 = vadd.f32 1.0, %v53_v5 }
  0x21   :  { %v30_v9 = vadd.f32 1.0, %v55_v7 }
  0x22   :  { %v31_v10 = vmul.f32 %v29_v8, %v23_v4 }
  0x23   :  { %v32_v11 = vmul.f32 %v30_v9, %v24_v6 }
  0x24   :  { %33 = vst [vmem:[#allocation5] sm:$0xff] %v31_v10 }
  0x25   :  { %34 = vst [vmem:[#allocation5 + $0x8] sm:$0xff] %v32_v11 }
  0x26   :  { %89 = shalt.err (!%p86_p12)
}
  0x27   :  { %s90_s22 = scalar_lea.hbm %s141_s1, 256 }
  0x28   :  { %p91_p13 = scmp.ne.s32.totalorder %s141_s1, %s90_s22  ;;  %p94_p0 = scmp.lt.u32.totalorder %s90_s22, %s141_s1 }
  0x2a   :  { %p96_p1 = pnand %p94_p0, %p91_p13 }
  0x2c   :  { %99 = shalt.err (!%p96_p1)
}
  0x2d   :  { %44 = dma.vmem_to_hbm [thread:$0]  %s42_s19, 256, %s141_s1, [#allocation4]  }
  0x2e   :  { %102 = dma.done.wait [#allocation4], 256  }
  0x2f   :  { %103 = vsyncadd [#allocation4], 4294967040 }
  0x30   :  { %48 = vsyncpa [#allocation3], 1 }
  0x31   :  { %49 = vsyncpa [#allocation4], 1 }

</bundles_post_ra>
